<compile_context>
chip_gen: v5e
topology: v5e:2x2
jax: 0.10.0
libtpu: 0.0.40
codegen_flags: <defaults>
</compile_context>

<pallas_src>
import functools

import numpy as np

import jax
import jax.numpy as jnp
from jax.experimental import pallas as pl
from jax.experimental.pallas import tpu as pltpu

_KER = 5
_STRIDE = 2
_PAD = 2
_COLS = 128          # lane-dense padded column width of every activation
_SLOPE = 0.1


def _out_hw(x):
    return (x + 2 * _PAD - _KER) // _STRIDE + 1


# ---------------------------------------------------------------------------
# Fused 3-layer kernel.  One grid step == one batch image.
# ---------------------------------------------------------------------------
def _fused_disc_kernel(x_ref,
                       b1_ref, t1_ref, b2_ref, t2_ref, b3_ref, t3_ref,
                       o1_ref, o2_ref, o3_ref,
                       p1_ref, p2_ref, *, h_outs):
    def layer(src_ref, h_out, b_ref, t_ref):
        # H-tap gather: tap di reads padded rows di, di+2, ..., di+2*(h_out-1).
        # Stride-2 sublane slices (load slot / no MXU contention), then one
        # K = 5*128 MXU matmul per layer.
        xg = jnp.concatenate(
            [src_ref[pl.ds(di, h_out, stride=_STRIDE), :] for di in range(_KER)],
            axis=-1)                                              # (h_out, 640)
        y = jnp.dot(xg, b_ref[...], preferred_element_type=jnp.float32)
        y = y + t_ref[...]                                        # (1,128) bcast
        return jnp.where(y >= 0.0, y, _SLOPE * y)

    ho1, ho2, ho3 = h_outs

    y1 = layer(x_ref, ho1, b1_ref, t1_ref)
    o1_ref[...] = y1
    p1_ref[...] = jnp.zeros_like(p1_ref)          # zero H-pad rows
    p1_ref[_PAD:_PAD + ho1, :] = y1               # real rows in the middle

    y2 = layer(p1_ref, ho2, b2_ref, t2_ref)
    o2_ref[...] = y2
    p2_ref[...] = jnp.zeros_like(p2_ref)
    p2_ref[_PAD:_PAD + ho2, :] = y2

    o3_ref[...] = layer(p2_ref, ho3, b3_ref, t3_ref)


# ---------------------------------------------------------------------------
# Weight transforms — precomputed ONCE per parameter set (hoisted out of the
# per-call path).
# ---------------------------------------------------------------------------
def _col_selector_const(w_in, w_out):
    # Sel[w, wo, dj] = 1  iff  w == 2*wo + dj - 2  (in-bounds taps only).
    s = np.zeros((w_in, w_out, _KER), np.float32)
    for w in range(w_in):
        for wo in range(w_out):
            dj = w - _STRIDE * wo + _PAD
            if 0 <= dj < _KER:
                s[w, wo, dj] = 1.0
    return s


def _banded_weights(wt, w_in, w_out):
    # wt: (O, Cin, 5, 5) (PyTorch OIHW).  Result (5*128, 128) with
    # Bcat[di*128 + w*C + c, wo*O + o] = wt[o, c, di, w - 2*wo + 2], else 0.
    o_dim, c_dim = int(wt.shape[0]), int(wt.shape[1])
    assert w_in * c_dim <= _COLS and w_out * o_dim <= _COLS, \
        "toy-geometry cap: widen _COLS (256 on v6e/v7x) for larger models"
    sel = jnp.asarray(_col_selector_const(w_in, w_out))        # (W, Wo, 5)
    b = jnp.einsum('wud,ocid->iwcuo', sel, wt)                  # (5, W, C, Wo, O)
    b = b.reshape(_KER, w_in * c_dim, w_out * o_dim)
    b = jnp.pad(b, ((0, 0),
                    (0, _COLS - w_in * c_dim),
                    (0, _COLS - w_out * o_dim)))
    return b.reshape(_KER * _COLS, _COLS)


def _bias_row(bias, w_out):
    t = jnp.tile(bias, w_out)                                   # col wo*O+o -> bias[o]
    return jnp.pad(t, (0, _COLS - t.shape[0])).reshape(1, _COLS)


def prepare_params(params, h, w):
    """Transform conv weights into banded matmul operands (done once)."""
    ops, meta = [], []
    for wt, bias in params:
        c_out = int(wt.shape[0])
        ho, wo = _out_hw(h), _out_hw(w)
        ops += [_banded_weights(wt, w, wo), _bias_row(bias, wo)]
        meta.append((c_out, ho, wo))
        h, w = ho, wo
    return tuple(ops), tuple(meta)


# ---------------------------------------------------------------------------
# Wrapper: NCHW in, (x1, x2, x3) NCHW out — same semantics as the nn.Module.
# ---------------------------------------------------------------------------
@functools.partial(jax.jit, static_argnums=(2,))
def discriminator_forward(x0, prepared, meta):
    n, c_in, h, w = x0.shape
    assert w * c_in <= _COLS
    hp = h + 2 * _PAD

    # Per-image activation tile: X[n, 2 + h, w*C + c], zero H-pad rows,
    # columns padded to 128 lanes.
    x2d = x0.transpose(0, 2, 3, 1).reshape(n, h, w * c_in)
    x2d = jnp.pad(x2d, ((0, 0), (_PAD, _PAD), (0, _COLS - w * c_in)))

    ho = tuple(m[1] for m in meta)

    weight_specs = []
    for _ in range(len(meta)):
        weight_specs.append(pl.BlockSpec((_KER * _COLS, _COLS), lambda i: (0, 0)))
        weight_specs.append(pl.BlockSpec((1, _COLS), lambda i: (0, 0)))

    outs = pl.pallas_call(
        functools.partial(_fused_disc_kernel, h_outs=ho),
        grid=(n,),
        in_specs=[pl.BlockSpec((None, hp, _COLS), lambda i: (i, 0, 0))]
                 + weight_specs,
        out_specs=[pl.BlockSpec((None, hoi, _COLS), lambda i: (i, 0, 0))
                   for hoi in ho],
        out_shape=tuple(jax.ShapeDtypeStruct((n, hoi, _COLS), jnp.float32)
                        for hoi in ho),
        scratch_shapes=[pltpu.VMEM((ho[0] + 2 * _PAD, _COLS), jnp.float32),
                        pltpu.VMEM((ho[1] + 2 * _PAD, _COLS), jnp.float32)],
        compiler_params=pltpu.CompilerParams(
            dimension_semantics=("parallel",)),
    )(x2d, *prepared)

    results = []
    for (c_out, hoi, woi), out in zip(meta, outs):
        y = out[:, :, :woi * c_out].reshape(n, hoi, woi, c_out)
        results.append(y.transpose(0, 3, 1, 2))                  # back to NCHW
    return tuple(results)


# ---------------------------------------------------------------------------
# Parameter init: enc1 (1->8), enc2 (8->16), enc3 (16->24), k=5, s=2, p=2
# ---------------------------------------------------------------------------
def init_discriminator_params(key):
    c_dim, ker = 8, 5
    specs = [(c_dim, 1), (c_dim * 2, c_dim), (c_dim * 3, c_dim * 2)]
    params = []
    for i, (out_c, in_c) in enumerate(specs):
        kw_key, kb_key = jax.random.split(jax.random.fold_in(key, i))
        fan_in = in_c * ker * ker
        bound = 1.0 / np.sqrt(fan_in)
        wgt = jax.random.uniform(kw_key, (out_c, in_c, ker, ker),
                                 jnp.float32, -bound, bound)
        b = jax.random.uniform(kb_key, (out_c,), jnp.float32, -bound, bound)
        params.append((wgt, b))
    return params


# Pure-JAX reference (correctness check only).
def _reference_forward(x0, params):
    def conv(x, wgt, b):
        y = jax.lax.conv_general_dilated(
            x, wgt, window_strides=(2, 2), padding=((2, 2), (2, 2)),
            dimension_numbers=("NCHW", "OIHW", "NCHW"),
            precision=jax.lax.Precision.HIGHEST)
        y = y + b.reshape(1, -1, 1, 1)
        return jnp.where(y >= 0.0, y, 0.1 * y)
    x1 = conv(x0, *params[0])
    x2 = conv(x1, *params[1])
    x3 = conv(x2, *params[2])
    return x1, x2, x3


if __name__ == "__main__":
    key = jax.random.PRNGKey(0)
    x_key, p_key = jax.random.split(key)

    # module expects 1 input channel: batch=2, channels=1, spatial=16x16
    x0 = jax.random.normal(x_key, (2, 1, 16, 16), dtype=jnp.float32)
    params = init_discriminator_params(p_key)

    prepared, meta = prepare_params(params, x0.shape[2], x0.shape[3])

    outs = discriminator_forward(x0, prepared, meta)
    outs = jax.tree_util.tree_map(jax.block_until_ready, outs)

    refs = _reference_forward(x0, params)
    for o_arr, r_arr in zip(outs, refs):
        assert o_arr.shape == r_arr.shape, (o_arr.shape, r_arr.shape)
        assert jnp.allclose(o_arr, r_arr, rtol=1e-4, atol=1e-4), \
            "mismatch vs reference"

    # x1: (2, 8, 8, 8), x2: (2, 16, 4, 4), x3: (2, 24, 2, 2)
    print("KERNEL_OK")
</pallas_src>

<mosaic_0001>
module attributes {stable_mosaic.version = 11 : i64} {
  func.func @_fused_disc_kernel(%arg0: i32, %arg1: memref<1x20x128xf32, #tpu.memory_space<vmem>>, %arg2: memref<640x128xf32, #tpu.memory_space<vmem>>, %arg3: memref<1x128xf32, #tpu.memory_space<vmem>>, %arg4: memref<640x128xf32, #tpu.memory_space<vmem>>, %arg5: memref<1x128xf32, #tpu.memory_space<vmem>>, %arg6: memref<640x128xf32, #tpu.memory_space<vmem>>, %arg7: memref<1x128xf32, #tpu.memory_space<vmem>>, %arg8: memref<1x8x128xf32, #tpu.memory_space<vmem>>, %arg9: memref<1x4x128xf32, #tpu.memory_space<vmem>>, %arg10: memref<1x2x128xf32, #tpu.memory_space<vmem>>, %arg11: memref<12x128xf32, #tpu.memory_space<vmem>>, %arg12: memref<8x128xf32, #tpu.memory_space<vmem>>) attributes {dimension_semantics = [#tpu.dimension_semantics<parallel>], iteration_bounds = array<i64: 2>, scalar_prefetch = 0 : i64, scratch_operands = 2 : i64, tpu.core_type = #tpu.core_type<tc>, window_params = [{transform_indices = @transform_0, window_bounds = array<i64: 1, 20, 128>}, {pipeline_mode = #tpu.pipeline_mode<synchronous>, transform_indices = @transform_1, window_bounds = array<i64: 640, 128>}, {pipeline_mode = #tpu.pipeline_mode<synchronous>, transform_indices = @transform_2, window_bounds = array<i64: 1, 128>}, {pipeline_mode = #tpu.pipeline_mode<synchronous>, transform_indices = @transform_3, window_bounds = array<i64: 640, 128>}, {pipeline_mode = #tpu.pipeline_mode<synchronous>, transform_indices = @transform_4, window_bounds = array<i64: 1, 128>}, {pipeline_mode = #tpu.pipeline_mode<synchronous>, transform_indices = @transform_5, window_bounds = array<i64: 640, 128>}, {pipeline_mode = #tpu.pipeline_mode<synchronous>, transform_indices = @transform_6, window_bounds = array<i64: 1, 128>}, {transform_indices = @transform_7, window_bounds = array<i64: 1, 8, 128>}, {transform_indices = @transform_8, window_bounds = array<i64: 1, 4, 128>}, {transform_indices = @transform_9, window_bounds = array<i64: 1, 2, 128>}]} {
    %c0 = arith.constant 0 : index
    %c0_0 = arith.constant 0 : index
    %c0_1 = arith.constant 0 : index
    %0 = tpu.strided_load %arg1[%c0, %c0_0, %c0_1] {strides = array<i32: 1, 2, 1>} : memref<1x20x128xf32, #tpu.memory_space<vmem>>, vector<1x8x128xf32>
    %1 = vector.shape_cast %0 : vector<1x8x128xf32> to vector<8x128xf32>
    %c0_2 = arith.constant 0 : index
    %c1 = arith.constant 1 : index
    %c0_3 = arith.constant 0 : index
    %2 = tpu.strided_load %arg1[%c0_2, %c1, %c0_3] {strides = array<i32: 1, 2, 1>} : memref<1x20x128xf32, #tpu.memory_space<vmem>>, vector<1x8x128xf32>
    %3 = vector.shape_cast %2 : vector<1x8x128xf32> to vector<8x128xf32>
    %c0_4 = arith.constant 0 : index
    %c2 = arith.constant 2 : index
    %c0_5 = arith.constant 0 : index
    %4 = tpu.strided_load %arg1[%c0_4, %c2, %c0_5] {strides = array<i32: 1, 2, 1>} : memref<1x20x128xf32, #tpu.memory_space<vmem>>, vector<1x8x128xf32>
    %5 = vector.shape_cast %4 : vector<1x8x128xf32> to vector<8x128xf32>
    %c0_6 = arith.constant 0 : index
    %c3 = arith.constant 3 : index
    %c0_7 = arith.constant 0 : index
    %6 = tpu.strided_load %arg1[%c0_6, %c3, %c0_7] {strides = array<i32: 1, 2, 1>} : memref<1x20x128xf32, #tpu.memory_space<vmem>>, vector<1x8x128xf32>
    %7 = vector.shape_cast %6 : vector<1x8x128xf32> to vector<8x128xf32>
    %c0_8 = arith.constant 0 : index
    %c4 = arith.constant 4 : index
    %c0_9 = arith.constant 0 : index
    %8 = tpu.strided_load %arg1[%c0_8, %c4, %c0_9] {strides = array<i32: 1, 2, 1>} : memref<1x20x128xf32, #tpu.memory_space<vmem>>, vector<1x8x128xf32>
    %9 = vector.shape_cast %8 : vector<1x8x128xf32> to vector<8x128xf32>
    %10 = tpu.concatenate %1, %3, %5, %7, %9 in 1 : vector<8x128xf32>, vector<8x128xf32>, vector<8x128xf32>, vector<8x128xf32>, vector<8x128xf32> -> vector<8x640xf32>
    %c0_10 = arith.constant 0 : index
    %c0_11 = arith.constant 0 : index
    %11 = vector.load %arg2[%c0_10, %c0_11] : memref<640x128xf32, #tpu.memory_space<vmem>>, vector<640x128xf32>
    %cst = arith.constant dense<0.000000e+00> : vector<8x128xf32>
    %12 = tpu.matmul %10, %11, %cst {dimension_numbers = #tpu.dot_dimension_numbers<[1], [0], [0], [1], [0, 0, 1, 1], [], []>} : vector<8x640xf32>, vector<640x128xf32>, vector<8x128xf32> -> vector<8x128xf32>
    %c0_12 = arith.constant 0 : index
    %c0_13 = arith.constant 0 : index
    %13 = vector.load %arg3[%c0_12, %c0_13] : memref<1x128xf32, #tpu.memory_space<vmem>>, vector<1x128xf32>
    %14 = vector.broadcast %13 : vector<1x128xf32> to vector<8x128xf32>
    %15 = arith.addf %12, %14 : vector<8x128xf32>
    %cst_14 = arith.constant 0.000000e+00 : f32
    %16 = vector.broadcast %cst_14 : f32 to vector<8x128xf32>
    %17 = arith.cmpf oge, %15, %16 : vector<8x128xf32>
    %cst_15 = arith.constant 1.000000e-01 : f32
    %18 = vector.broadcast %cst_15 : f32 to vector<8x128xf32>
    %19 = arith.mulf %18, %15 : vector<8x128xf32>
    %20 = arith.select %17, %15, %19 : vector<8x128xi1>, vector<8x128xf32>
    %c0_16 = arith.constant 0 : index
    %c0_17 = arith.constant 0 : index
    %c0_18 = arith.constant 0 : index
    %21 = vector.load %arg8[%c0_16, %c0_17, %c0_18] : memref<1x8x128xf32, #tpu.memory_space<vmem>>, vector<1x8x128xf32>
    %22 = vector.shape_cast %21 : vector<1x8x128xf32> to vector<8x128xf32>
    %23 = vector.shape_cast %20 : vector<8x128xf32> to vector<1x8x128xf32>
    tpu.vector_store %arg8[%c0_16, %c0_17, %c0_18], %23 {strides = array<i32>} : memref<1x8x128xf32, #tpu.memory_space<vmem>>, vector<1x8x128xf32>,
    %cst_19 = arith.constant 0.000000e+00 : f32
    %24 = vector.broadcast %cst_19 : f32 to vector<12x128xf32>
    %c0_20 = arith.constant 0 : index
    %c0_21 = arith.constant 0 : index
    %25 = vector.load %arg11[%c0_20, %c0_21] : memref<12x128xf32, #tpu.memory_space<vmem>>, vector<12x128xf32>
    tpu.vector_store %arg11[%c0_20, %c0_21], %24 {strides = array<i32>} : memref<12x128xf32, #tpu.memory_space<vmem>>, vector<12x128xf32>,
    %c2_22 = arith.constant 2 : index
    %c0_23 = arith.constant 0 : index
    %26 = vector.load %arg11[%c2_22, %c0_23] : memref<12x128xf32, #tpu.memory_space<vmem>>, vector<8x128xf32>
    tpu.vector_store %arg11[%c2_22, %c0_23], %20 {strides = array<i32>} : memref<12x128xf32, #tpu.memory_space<vmem>>, vector<8x128xf32>,
    %c0_24 = arith.constant 0 : index
    %c0_25 = arith.constant 0 : index
    %27 = tpu.strided_load %arg11[%c0_24, %c0_25] {strides = array<i32: 2, 1>} : memref<12x128xf32, #tpu.memory_space<vmem>>, vector<4x128xf32>
    %c1_26 = arith.constant 1 : index
    %c0_27 = arith.constant 0 : index
    %28 = tpu.strided_load %arg11[%c1_26, %c0_27] {strides = array<i32: 2, 1>} : memref<12x128xf32, #tpu.memory_space<vmem>>, vector<4x128xf32>
    %c2_28 = arith.constant 2 : index
    %c0_29 = arith.constant 0 : index
    %29 = tpu.strided_load %arg11[%c2_28, %c0_29] {strides = array<i32: 2, 1>} : memref<12x128xf32, #tpu.memory_space<vmem>>, vector<4x128xf32>
    %c3_30 = arith.constant 3 : index
    %c0_31 = arith.constant 0 : index
    %30 = tpu.strided_load %arg11[%c3_30, %c0_31] {strides = array<i32: 2, 1>} : memref<12x128xf32, #tpu.memory_space<vmem>>, vector<4x128xf32>
    %c4_32 = arith.constant 4 : index
    %c0_33 = arith.constant 0 : index
    %31 = tpu.strided_load %arg11[%c4_32, %c0_33] {strides = array<i32: 2, 1>} : memref<12x128xf32, #tpu.memory_space<vmem>>, vector<4x128xf32>
    %32 = tpu.concatenate %27, %28, %29, %30, %31 in 1 : vector<4x128xf32>, vector<4x128xf32>, vector<4x128xf32>, vector<4x128xf32>, vector<4x128xf32> -> vector<4x640xf32>
    %c0_34 = arith.constant 0 : index
    %c0_35 = arith.constant 0 : index
    %33 = vector.load %arg4[%c0_34, %c0_35] : memref<640x128xf32, #tpu.memory_space<vmem>>, vector<640x128xf32>
    %cst_36 = arith.constant dense<0.000000e+00> : vector<4x128xf32>
    %34 = tpu.matmul %32, %33, %cst_36 {dimension_numbers = #tpu.dot_dimension_numbers<[1], [0], [0], [1], [0, 0, 1, 1], [], []>} : vector<4x640xf32>, vector<640x128xf32>, vector<4x128xf32> -> vector<4x128xf32>
    %c0_37 = arith.constant 0 : index
    %c0_38 = arith.constant 0 : index
    %35 = vector.load %arg5[%c0_37, %c0_38] : memref<1x128xf32, #tpu.memory_space<vmem>>, vector<1x128xf32>
    %36 = vector.broadcast %35 : vector<1x128xf32> to vector<4x128xf32>
    %37 = arith.addf %34, %36 : vector<4x128xf32>
    %cst_39 = arith.constant 0.000000e+00 : f32
    %38 = vector.broadcast %cst_39 : f32 to vector<4x128xf32>
    %39 = arith.cmpf oge, %37, %38 : vector<4x128xf32>
    %cst_40 = arith.constant 1.000000e-01 : f32
    %40 = vector.broadcast %cst_40 : f32 to vector<4x128xf32>
    %41 = arith.mulf %40, %37 : vector<4x128xf32>
    %42 = arith.select %39, %37, %41 : vector<4x128xi1>, vector<4x128xf32>
    %c0_41 = arith.constant 0 : index
    %c0_42 = arith.constant 0 : index
    %c0_43 = arith.constant 0 : index
    %43 = vector.load %arg9[%c0_41, %c0_42, %c0_43] : memref<1x4x128xf32, #tpu.memory_space<vmem>>, vector<1x4x128xf32>
    %44 = vector.shape_cast %43 : vector<1x4x128xf32> to vector<4x128xf32>
    %45 = vector.shape_cast %42 : vector<4x128xf32> to vector<1x4x128xf32>
    tpu.vector_store %arg9[%c0_41, %c0_42, %c0_43], %45 {strides = array<i32>} : memref<1x4x128xf32, #tpu.memory_space<vmem>>, vector<1x4x128xf32>,
    %cst_44 = arith.constant 0.000000e+00 : f32
    %46 = vector.broadcast %cst_44 : f32 to vector<8x128xf32>
    %c0_45 = arith.constant 0 : index
    %c0_46 = arith.constant 0 : index
    %47 = vector.load %arg12[%c0_45, %c0_46] : memref<8x128xf32, #tpu.memory_space<vmem>>, vector<8x128xf32>
    tpu.vector_store %arg12[%c0_45, %c0_46], %46 {strides = array<i32>} : memref<8x128xf32, #tpu.memory_space<vmem>>, vector<8x128xf32>,
    %c2_47 = arith.constant 2 : index
    %c0_48 = arith.constant 0 : index
    %48 = vector.load %arg12[%c2_47, %c0_48] : memref<8x128xf32, #tpu.memory_space<vmem>>, vector<4x128xf32>
    tpu.vector_store %arg12[%c2_47, %c0_48], %42 {strides = array<i32>} : memref<8x128xf32, #tpu.memory_space<vmem>>, vector<4x128xf32>,
    %c0_49 = arith.constant 0 : index
    %c0_50 = arith.constant 0 : index
    %49 = tpu.strided_load %arg12[%c0_49, %c0_50] {strides = array<i32: 2, 1>} : memref<8x128xf32, #tpu.memory_space<vmem>>, vector<2x128xf32>
    %c1_51 = arith.constant 1 : index
    %c0_52 = arith.constant 0 : index
    %50 = tpu.strided_load %arg12[%c1_51, %c0_52] {strides = array<i32: 2, 1>} : memref<8x128xf32, #tpu.memory_space<vmem>>, vector<2x128xf32>
    %c2_53 = arith.constant 2 : index
    %c0_54 = arith.constant 0 : index
    %51 = tpu.strided_load %arg12[%c2_53, %c0_54] {strides = array<i32: 2, 1>} : memref<8x128xf32, #tpu.memory_space<vmem>>, vector<2x128xf32>
    %c3_55 = arith.constant 3 : index
    %c0_56 = arith.constant 0 : index
    %52 = tpu.strided_load %arg12[%c3_55, %c0_56] {strides = array<i32: 2, 1>} : memref<8x128xf32, #tpu.memory_space<vmem>>, vector<2x128xf32>
    %c4_57 = arith.constant 4 : index
    %c0_58 = arith.constant 0 : index
    %53 = tpu.strided_load %arg12[%c4_57, %c0_58] {strides = array<i32: 2, 1>} : memref<8x128xf32, #tpu.memory_space<vmem>>, vector<2x128xf32>
    %54 = tpu.concatenate %49, %50, %51, %52, %53 in 1 : vector<2x128xf32>, vector<2x128xf32>, vector<2x128xf32>, vector<2x128xf32>, vector<2x128xf32> -> vector<2x640xf32>
    %c0_59 = arith.constant 0 : index
    %c0_60 = arith.constant 0 : index
    %55 = vector.load %arg6[%c0_59, %c0_60] : memref<640x128xf32, #tpu.memory_space<vmem>>, vector<640x128xf32>
    %cst_61 = arith.constant dense<0.000000e+00> : vector<2x128xf32>
    %56 = tpu.matmul %54, %55, %cst_61 {dimension_numbers = #tpu.dot_dimension_numbers<[1], [0], [0], [1], [0, 0, 1, 1], [], []>} : vector<2x640xf32>, vector<640x128xf32>, vector<2x128xf32> -> vector<2x128xf32>
    %c0_62 = arith.constant 0 : index
    %c0_63 = arith.constant 0 : index
    %57 = vector.load %arg7[%c0_62, %c0_63] : memref<1x128xf32, #tpu.memory_space<vmem>>, vector<1x128xf32>
    %58 = vector.broadcast %57 : vector<1x128xf32> to vector<2x128xf32>
    %59 = arith.addf %56, %58 : vector<2x128xf32>
    %cst_64 = arith.constant 0.000000e+00 : f32
    %60 = vector.broadcast %cst_64 : f32 to vector<2x128xf32>
    %61 = arith.cmpf oge, %59, %60 : vector<2x128xf32>
    %cst_65 = arith.constant 1.000000e-01 : f32
    %62 = vector.broadcast %cst_65 : f32 to vector<2x128xf32>
    %63 = arith.mulf %62, %59 : vector<2x128xf32>
    %64 = arith.select %61, %59, %63 : vector<2x128xi1>, vector<2x128xf32>
    %c0_66 = arith.constant 0 : index
    %c0_67 = arith.constant 0 : index
    %c0_68 = arith.constant 0 : index
    %65 = vector.load %arg10[%c0_66, %c0_67, %c0_68] : memref<1x2x128xf32, #tpu.memory_space<vmem>>, vector<1x2x128xf32>
    %66 = vector.shape_cast %65 : vector<1x2x128xf32> to vector<2x128xf32>
    %67 = vector.shape_cast %64 : vector<2x128xf32> to vector<1x2x128xf32>
    tpu.vector_store %arg10[%c0_66, %c0_67, %c0_68], %67 {strides = array<i32>} : memref<1x2x128xf32, #tpu.memory_space<vmem>>, vector<1x2x128xf32>,
    return
  }
  func.func @transform_0(%arg0: i32) -> (i32, i32, i32) {
    %c0_i32 = arith.constant 0 : i32
    %c0_i32_0 = arith.constant 0 : i32
    %c0_i32_1 = arith.constant 0 : i32
    return %arg0, %c0_i32, %c0_i32_0 : i32, i32, i32
  }
  func.func @transform_1(%arg0: i32) -> (i32, i32) {
    %c0_i32 = arith.constant 0 : i32
    %c0_i32_0 = arith.constant 0 : i32
    %c0_i32_1 = arith.constant 0 : i32
    return %c0_i32, %c0_i32_0 : i32, i32
  }
  func.func @transform_2(%arg0: i32) -> (i32, i32) {
    %c0_i32 = arith.constant 0 : i32
    %c0_i32_0 = arith.constant 0 : i32
    %c0_i32_1 = arith.constant 0 : i32
    return %c0_i32, %c0_i32_0 : i32, i32
  }
  func.func @transform_3(%arg0: i32) -> (i32, i32) {
    %c0_i32 = arith.constant 0 : i32
    %c0_i32_0 = arith.constant 0 : i32
    %c0_i32_1 = arith.constant 0 : i32
    return %c0_i32, %c0_i32_0 : i32, i32
  }
  func.func @transform_4(%arg0: i32) -> (i32, i32) {
    %c0_i32 = arith.constant 0 : i32
    %c0_i32_0 = arith.constant 0 : i32
    %c0_i32_1 = arith.constant 0 : i32
    return %c0_i32, %c0_i32_0 : i32, i32
  }
  func.func @transform_5(%arg0: i32) -> (i32, i32) {
    %c0_i32 = arith.constant 0 : i32
    %c0_i32_0 = arith.constant 0 : i32
    %c0_i32_1 = arith.constant 0 : i32
    return %c0_i32, %c0_i32_0 : i32, i32
  }
  func.func @transform_6(%arg0: i32) -> (i32, i32) {
    %c0_i32 = arith.constant 0 : i32
    %c0_i32_0 = arith.constant 0 : i32
    %c0_i32_1 = arith.constant 0 : i32
    return %c0_i32, %c0_i32_0 : i32, i32
  }
  func.func @transform_7(%arg0: i32) -> (i32, i32, i32) {
    %c0_i32 = arith.constant 0 : i32
    %c0_i32_0 = arith.constant 0 : i32
    %c0_i32_1 = arith.constant 0 : i32
    return %arg0, %c0_i32, %c0_i32_0 : i32, i32, i32
  }
  func.func @transform_8(%arg0: i32) -> (i32, i32, i32) {
    %c0_i32 = arith.constant 0 : i32
    %c0_i32_0 = arith.constant 0 : i32
    %c0_i32_1 = arith.constant 0 : i32
    return %arg0, %c0_i32, %c0_i32_0 : i32, i32, i32
  }
  func.func @transform_9(%arg0: i32) -> (i32, i32, i32) {
    %c0_i32 = arith.constant 0 : i32
    %c0_i32_0 = arith.constant 0 : i32
    %c0_i32_1 = arith.constant 0 : i32
    return %arg0, %c0_i32, %c0_i32_0 : i32, i32, i32
  }
}

</mosaic_0001>

<bundles_post_ra>
// kernel: discriminator_forward.1
= control target key start
LH: loop header
LB: loop body
LE: loop exit
PB: predicated region body
PF: predicated region fallthrough
CT: control target
= control target key end

     0   :  { %15 = vsyncpa [#allocation5], 0  ;;  %s1452_s0 = inlined_call_operand.vmem [shape: f32[2,20,128], index: 0, kind: input, shape index: {}]   ;;  %s1453_s1 = inlined_call_operand.hbm [shape: f32[640,128], index: 1, kind: input, shape index: {}]   ;;  %s1454_s2 = inlined_call_operand.vmem [shape: f32[1,128], index: 2, kind: input, shape index: {}]   ;;  %s1455_s3 = inlined_call_operand.hbm [shape: f32[640,128], index: 3, kind: input, shape index: {}]   ;;  %s1456_s4 = inlined_call_operand.vmem [shape: f32[1,128], index: 4, kind: input, shape index: {}]   ;;  %s1457_s5 = inlined_call_operand.hbm [shape: f32[640,128], index: 5, kind: input, shape index: {}]   ;;  %s1458_s6 = inlined_call_operand.vmem [shape: f32[1,128], index: 6, kind: input, shape index: {}]   ;;  %s1459_s7 = inlined_call_operand.vmem [shape: f32[2,8,128], index: 7, kind: output, shape index: {0}]   ;;  %s1460_s8 = inlined_call_operand.vmem [shape: f32[2,4,128], index: 8, kind: output, shape index: {1}]   ;;  %s1461_s9 = inlined_call_operand.vmem [shape: f32[2,2,128], index: 9, kind: output, shape index: {2}]  }
   0x1   :  { %16 = vsyncpa [#allocation7], 0  ;;  %s1373_s30 = smov 0  }
   0x2 LB: > { %s1379_s10 = sadd.s32 4294967295, %s1315_s30   ;;  %p1146_p0 = scmp.ge.s32.totalorder %s1315_s30, 1  ;;  %s1315_s30 = sphi %s1373_s30, %s22_s30  }
   0x3   : > { %p257_p1 = scmp.lt.s32.totalorder %s1315_s30, 3  ;;  %p1188_p2 = scmp.eq.s32.totalorder %s1379_s10, 0 }
   0x4   : > { %s285_s13 = sshll.u32 %s1455_s3, 4  ;;  %s268_s17 = sshll.u32 %s1453_s1, 4  ;;  %s286_s13 = int_to_ptr.hbm [resolvable:$true] %s285_s13  ;;  %s269_s17 = int_to_ptr.hbm [resolvable:$true] %s268_s17 }
   0x5   : > { %p1387_p3 = pnand %p1146_p0, %p257_p1  ;;  %s1317_s18 = smov [#allocation6]  }
   0x6   : > { %s287_s19 = sshll.u32 %s1317_s18, 4  ;;  %s1318_s20 = smov [#allocation4]   ;;  %s288_s19 = int_to_ptr.vmem [resolvable:$true] %s287_s19 }
   0x7   : > { %p1178_p4 = pneg %p1387_p3  ;;  %s270_s21 = sshll.u32 %s1318_s20, 4  ;;  %s271_s21 = int_to_ptr.vmem [resolvable:$true] %s270_s21 }
   0x8   : > { %s302_s24 = sshll.u32 %s1457_s5, 4  ;;  %s1319_s25 = smov 128   ;;  %s303_s24 = int_to_ptr.hbm [resolvable:$true] %s302_s24 }
   0x9   : > { %p1179_p5 = pnand %p1188_p2, %p1178_p4  ;;  %s1320_s26 = smov 8  }
   0xa   : > { %s1321_s27 = smov [#allocation8]   ;;  %331 = sbr.rel (%p1387_p3) target bundleno = 520 (0x208), region = 48 }
   0xb   : > { %1184 = dma.hbm_to_vmem [thread:$0]  (!%p1179_p5), %s286_s13, 10240, %s288_s19, [#allocation7], %s1319_s25, %s1319_s25, %s1320_s26  }
   0xc   : > { %1181 = dma.hbm_to_vmem [thread:$0]  (!%p1179_p5), %s269_s17, 10240, %s271_s21, [#allocation5], %s1319_s25, %s1319_s25, %s1320_s26  }
   0xd   : > { %s304_s28 = sshll.u32 %s1321_s27, 4  ;;  %s305_s28 = int_to_ptr.vmem [resolvable:$true] %s304_s28 }
   0xe   : > { %1187 = dma.hbm_to_vmem [thread:$0]  (!%p1179_p5), %s303_s24, 10240, %s305_s28, [#allocation7], %s1319_s25, %s1319_s25, %s1320_s26  }
   0xf   : > { %1306 = dma.done.wait (%p1188_p2), [#allocation5], 10240  }
  0x10   : > { %1308 = vsyncadd (%p1188_p2), [#allocation5], 4294957056 }
  0x11   : > { %1310 = dma.done.wait (%p1188_p2), [#allocation7], 20480  }
  0x12   : > { %1312 = vsyncadd (%p1188_p2), [#allocation7], 4294946816  ;;  %v426_v0 = vld [vmem:[#allocation4 + $0x78] sm:$0xff]  ;;  %v425_v1 = vld [vmem:[#allocation4 + $0x70] sm:$0xff]  ;;  %p385_p6 = scmp.lt.s32.totalorder %s1379_s10, 1 }
  0x13   : > { %495 = vmatpush.msra.mxu0 %v426_v0  ;;  %v424_v2 = vld [vmem:[#allocation4 + $0x68] sm:$0xff]  ;;  %v458_v3 = vld [vmem:[#allocation4 + $0x178] sm:$0xff]  ;;  %v423_v4 = vld [vmem:[#allocation4 + $0x60] sm:$0xff] }
  0x14   : > { %535 = vmatpush.msra.mxu2 %v458_v3  ;;  %v457_v5 = vld [vmem:[#allocation4 + $0x170] sm:$0xff]  ;;  %v474_v6 = vld [vmem:[#allocation4 + $0x1f8] sm:$0xff]  ;;  %v456_v8 = vld [vmem:[#allocation4 + $0x168] sm:$0xff]  ;;  %s1464_s10 = smov (!%p385_p6, %s1379_s10), 1 }
  0x15   : > { %496 = vmatpush.msra.mxu0 %v425_v1  ;;  %555 = vmatpush.msra.mxu3 %v474_v6  ;;  %v442_v7 = vld [vmem:[#allocation4 + $0xf8] sm:$0xff]  ;;  %v473_v10 = vld [vmem:[#allocation4 + $0x1f0] sm:$0xff]  ;;  %v455_v12 = vld [vmem:[#allocation4 + $0x160] sm:$0xff]  ;;  %s1165_s29 = smul.u32 24, %s1464_s10  ;;  %s1156_s16 = sshll.u32 %s1464_s10, 3 }
  0x16   : > { %v422_v9 = vld [vmem:[#allocation4 + $0x58] sm:$0xff]  ;;  %536 = vmatpush.msra.mxu2 %v457_v5  ;;  %515 = vmatpush.msra.mxu1 %v442_v7  ;;  %v441_v11 = vld [vmem:[#allocation4 + $0xf0] sm:$0xff]  ;;  %v472_v13 = vld [vmem:[#allocation4 + $0x1e8] sm:$0xff]  ;;  %s393_s19 = scalar_lea.vmem %s1459_s7, %s1156_s16  ;;  %s1157_s22 = sshll.u32 %s1464_s10, 2 }
  0x17   : > { %497 = vmatpush.msra.mxu0 %v424_v2  ;;  %556 = vmatpush.msra.mxu3 %v473_v10  ;;  %v421_v14 = vld [vmem:[#allocation4 + $0x50] sm:$0xff]  ;;  %v440_v15 = vld [vmem:[#allocation4 + $0xe8] sm:$0xff]  ;;  %v471_v16 = vld [vmem:[#allocation4 + $0x1e0] sm:$0xff]  ;;  %s1421_s13 = scalar_lea.vmem %s1452_s0, %s1165_s29  ;;  %s397_s25 = scalar_lea.vmem %s1460_s8, %s1157_s22 }
  0x18   : > { %537 = vmatpush.msra.mxu2 %v456_v8  ;;  %516 = vmatpush.msra.mxu1 %v441_v11  ;;  %v454_v17 = vld [vmem:[#allocation4 + $0x158] sm:$0xff]  ;;  %v439_v18 = vld [vmem:[#allocation4 + $0xe0] sm:$0xff]  ;;  %v420_v19 = vld [vmem:[#allocation4 + $0x48] sm:$0xff]  ;;  %s1158_s28 = sshll.u32 %s1464_s10, 1 }
  0x19   : > { %498 = vmatpush.msra.mxu0 %v423_v4  ;;  %557 = vmatpush.msra.mxu3 %v472_v13  ;;  %v470_v20 = vld [vmem:[#allocation4 + $0x1d8] sm:$0xff]  ;;  %v453_v21 = vld [vmem:[#allocation4 + $0x150] sm:$0xff]  ;;  %v419_v23 = vld [vmem:[#allocation4 + $0x40] sm:$0xff]  ;;  %s401_s12 = scalar_lea.vmem %s1461_s9, %s1158_s28 }
  0x1a   : > { %538 = vmatpush.msra.mxu2 %v455_v12  ;;  %517 = vmatpush.msra.mxu1 %v440_v15  ;;  %v438_v22 = vld [vmem:[#allocation4 + $0xd8] sm:$0xff]  ;;  %v469_v24 = vld [vmem:[#allocation4 + $0x1d0] sm:$0xff]  ;;  %v452_v25 = vld [vmem:[#allocation4 + $0x148] sm:$0xff] }
  0x1b   : > { %499 = vmatpush.msra.mxu0 %v422_v9  ;;  %558 = vmatpush.msra.mxu3 %v471_v16  ;;  %v437_v26 = vld [vmem:[#allocation4 + $0xd0] sm:$0xff]  ;;  %v418_v27 = vld [vmem:[#allocation4 + $0x38] sm:$0xff]  ;;  %v468_v28 = vld [vmem:[#allocation4 + $0x1c8] sm:$0xff] }
  0x1c   : > { %539 = vmatpush.msra.mxu2 %v454_v17  ;;  %518 = vmatpush.msra.mxu1 %v439_v18  ;;  %v451_v29 = vld [vmem:[#allocation4 + $0x140] sm:$0xff]  ;;  %v436_v30 = vld [vmem:[#allocation4 + $0xc8] sm:$0xff]  ;;  %v417_v31 = vld [vmem:[#allocation4 + $0x30] sm:$0xff] }
  0x1d   : > { %500 = vmatpush.msra.mxu0 %v421_v14  ;;  %559 = vmatpush.msra.mxu3 %v470_v20  ;;  %v467_v32 = vld [vmem:[#allocation4 + $0x1c0] sm:$0xff]  ;;  %v450_v33 = vld [vmem:[#allocation4 + $0x138] sm:$0xff]  ;;  %v416_v35 = vld [vmem:[#allocation4 + $0x28] sm:$0xff] }
  0x1e   : > { %540 = vmatpush.msra.mxu2 %v453_v21  ;;  %519 = vmatpush.msra.mxu1 %v438_v22  ;;  %v435_v34 = vld [vmem:[#allocation4 + $0xc0] sm:$0xff]  ;;  %v466_v36 = vld [vmem:[#allocation4 + $0x1b8] sm:$0xff]  ;;  %v449_v37 = vld [vmem:[#allocation4 + $0x130] sm:$0xff] }
  0x1f   : > { %501 = vmatpush.msra.mxu0 %v420_v19  ;;  %560 = vmatpush.msra.mxu3 %v469_v24  ;;  %v434_v38 = vld [vmem:[#allocation4 + $0xb8] sm:$0xff]  ;;  %v415_v39 = vld [vmem:[#allocation4 + $0x20] sm:$0xff]  ;;  %v465_v40 = vld [vmem:[#allocation4 + $0x1b0] sm:$0xff] }
  0x20   : > { %541 = vmatpush.msra.mxu2 %v452_v25  ;;  %520 = vmatpush.msra.mxu1 %v437_v26  ;;  %v448_v41 = vld [vmem:[#allocation4 + $0x128] sm:$0xff]  ;;  %v433_v42 = vld [vmem:[#allocation4 + $0xb0] sm:$0xff]  ;;  %v414_v43 = vld [vmem:[#allocation4 + $0x18] sm:$0xff] }
  0x21   : > { %502 = vmatpush.msra.mxu0 %v419_v23  ;;  %561 = vmatpush.msra.mxu3 %v468_v28  ;;  %v464_v44 = vld [vmem:[#allocation4 + $0x1a8] sm:$0xff]  ;;  %v447_v45 = vld [vmem:[#allocation4 + $0x120] sm:$0xff]  ;;  %v413_v47 = vld [vmem:[#allocation4 + $0x10] sm:$0xff] }
  0x22   : > { %542 = vmatpush.msra.mxu2 %v451_v29  ;;  %521 = vmatpush.msra.mxu1 %v436_v30  ;;  %v432_v46 = vld [vmem:[#allocation4 + $0xa8] sm:$0xff]  ;;  %v463_v48 = vld [vmem:[#allocation4 + $0x1a0] sm:$0xff]  ;;  %v446_v49 = vld [vmem:[#allocation4 + $0x118] sm:$0xff] }
  0x23   : > { %503 = vmatpush.msra.mxu0 %v418_v27  ;;  %562 = vmatpush.msra.mxu3 %v467_v32  ;;  %v431_v50 = vld [vmem:[#allocation4 + $0xa0] sm:$0xff]  ;;  %v412_v51 = vld [vmem:[#allocation4 + $0x8] sm:$0xff]  ;;  %v462_v53 = vld [vmem:[#allocation4 + $0x198] sm:$0xff] }
  0x24   : > { %543 = vmatpush.msra.mxu2 %v450_v33  ;;  %522 = vmatpush.msra.mxu1 %v435_v34  ;;  %v411_v52 = vld [vmem:[#allocation4] sm:$0xff]  ;;  %v445_v54 = vld [vmem:[#allocation4 + $0x110] sm:$0xff]  ;;  %v430_v55 = vld [vmem:[#allocation4 + $0x98] sm:$0xff] }
  0x25   : > { %504 = vmatpush.msra.mxu0 %v417_v31  ;;  %563 = vmatpush.msra.mxu3 %v466_v36  ;;  %v461_v56 = vld [vmem:[#allocation4 + $0x190] sm:$0xff]  ;;  %v490_v57 = vld [vmem:[#allocation4 + $0x278] sm:$0xff]  ;;  %v444_v58 = vld [vmem:[#allocation4 + $0x108] sm:$0xff] }
  0x26   : > { %544 = vmatpush.msra.mxu2 %v449_v37  ;;  %523 = vmatpush.msra.mxu1 %v434_v38  ;;  %v429_v59 = vld [vmem:[#allocation4 + $0x90] sm:$0xff]  ;;  %v460_v60 = vld [vmem:[#allocation4 + $0x188] sm:$0xff]  ;;  %v443_v62 = vld [vmem:[#allocation4 + $0x100] sm:$0xff] }
  0x27   : > { %505 = vmatpush.msra.mxu0 %v416_v35  ;;  %564 = vmatpush.msra.mxu3 %v465_v40  ;;  %v489_v61 = vld [vmem:[#allocation4 + $0x270] sm:$0xff]  ;;  %v428_v0 = vld [vmem:[#allocation4 + $0x88] sm:$0xff]  ;;  %v459_v2 = vld [vmem:[#allocation4 + $0x180] sm:$0xff] }
  0x28   : > { %545 = vmatpush.msra.mxu2 %v448_v41  ;;  %524 = vmatpush.msra.mxu1 %v433_v42  ;;  %v1160_v63 = vld [vmem:[%s1421_s13 + $0x2] ss:$2 sm:$0xff]  ;;  %v1161_v4 = vld [vmem:[%s1421_s13 + $0x3] ss:$2 sm:$0xff]  ;;  %v487_v5 = vld [vmem:[#allocation4 + $0x260] sm:$0xff] }
  0x29   : > { %506 = vmatpush.msra.mxu0 %v415_v39  ;;  %565 = vmatpush.msra.mxu3 %v464_v44  ;;  %v488_v1 = vld [vmem:[#allocation4 + $0x268] sm:$0xff]  ;;  %v427_v6 = vld [vmem:[#allocation4 + $0x80] sm:$0xff]  ;;  %v642_v8 = vld [vmem:[#allocation6 + $0xf8] sm:$0xff] }
  0x2a   : > { %546 = vmatpush.msra.mxu2 %v447_v45  ;;  %525 = vmatpush.msra.mxu1 %v432_v46  ;;  %v402_v3 = vld [vmem:[%s1421_s13] ss:$2 sm:$0xff]  ;;  %v1159_v7 = vld [vmem:[%s1421_s13 + $0x1] ss:$2 sm:$0xff]  ;;  %v486_v9 = vld [vmem:[#allocation4 + $0x258] sm:$0xff] }
  0x2b   : > { %507 = vmatpush.msra.mxu0 %v414_v43  ;;  %566 = vmatpush.msra.mxu3 %v463_v48  ;;  %v626_v10 = vld [vmem:[#allocation6 + $0x78] sm:$0xff]  ;;  %v641_v12 = vld [vmem:[#allocation6 + $0xf0] sm:$0xff]  ;;  %v640_v16 = vld [vmem:[#allocation6 + $0xe8] sm:$0xff] }
  0x2c   : > { %547 = vmatpush.msra.mxu2 %v446_v49  ;;  %526 = vmatpush.msra.mxu1 %v431_v50  ;;  %v658_v11 = vld [vmem:[#allocation6 + $0x178] sm:$0xff]  ;;  %v485_v13 = vld [vmem:[#allocation4 + $0x250] sm:$0xff]  ;;  %v484_v17 = vld [vmem:[#allocation4 + $0x248] sm:$0xff] }
  0x2d   : > { %508 = vmatpush.msra.mxu0 %v413_v47  ;;  %567 = vmatpush.msra.mxu3 %v462_v53  ;;  %v625_v14 = vld [vmem:[#allocation6 + $0x70] sm:$0xff]  ;;  %v624_v18 = vld [vmem:[#allocation6 + $0x68] sm:$0xff]  ;;  %v639_v20 = vld [vmem:[#allocation6 + $0xe0] sm:$0xff] }
  0x2e   : > { %548 = vmatpush.msra.mxu2 %v445_v54  ;;  %527 = vmatpush.msra.mxu1 %v430_v55  ;;  %v657_v15 = vld [vmem:[#allocation6 + $0x170] sm:$0xff]  ;;  %v656_v19 = vld [vmem:[#allocation6 + $0x168] sm:$0xff]  ;;  %v483_v21 = vld [vmem:[#allocation4 + $0x240] sm:$0xff] }
  0x2f   : > { %509 = vmatpush.msra.mxu0 %v412_v51  ;;  %568 = vmatpush.msra.mxu3 %v461_v56  ;;  %v623_v22 = vld [vmem:[#allocation6 + $0x60] sm:$0xff]  ;;  %v638_v24 = vld [vmem:[#allocation6 + $0xd8] sm:$0xff]  ;;  %v481_v28 = vld [vmem:[#allocation4 + $0x230] sm:$0xff] }
  0x30   : > { %549 = vmatpush.msra.mxu2 %v444_v58  ;;  %528 = vmatpush.msra.mxu1 %v429_v59  ;;  %v655_v23 = vld [vmem:[#allocation6 + $0x160] sm:$0xff]  ;;  %v482_v25 = vld [vmem:[#allocation4 + $0x238] sm:$0xff]  ;;  %v621_v29 = vld [vmem:[#allocation6 + $0x50] sm:$0xff] }
  0x31   : > { %510 = vmatpush.msra.mxu0 %v411_v52  ;;  %569 = vmatpush.msra.mxu3 %v460_v60  ;;  %v622_v26 = vld [vmem:[#allocation6 + $0x58] sm:$0xff]  ;;  %v480_v30 = vld [vmem:[#allocation4 + $0x228] sm:$0xff]  ;;  %v479_v32 = vld [vmem:[#allocation4 + $0x220] sm:$0xff] }
  0x32   : > { %550 = vmatpush.msra.mxu2 %v443_v62  ;;  %529 = vmatpush.msra.mxu1 %v428_v0  ;;  %v654_v27 = vld [vmem:[#allocation6 + $0x158] sm:$0xff]  ;;  %v620_v31 = vld [vmem:[#allocation6 + $0x48] sm:$0xff]  ;;  %v619_v33 = vld [vmem:[#allocation6 + $0x40] sm:$0xff] }
  0x33   : > { %575 = vmatpush.msrb.mxu0 %v490_v57  ;;  %551 = vmatmul.f32.vlgmr.msra.gmra.mxu2 %v1160_v63  ;;  %v478_v34 = vld [vmem:[#allocation4 + $0x218] sm:$0xff]  ;;  %v477_v36 = vld [vmem:[#allocation4 + $0x210] sm:$0xff]  ;;  %v476_v38 = vld [vmem:[#allocation4 + $0x208] sm:$0xff] }
  0x34   : > { %570 = vmatpush.msra.mxu3 %v459_v2  ;;  %511 = vmatmul.f32.vlgmr.msra.gmra.mxu0 %v402_v3  ;;  %v618_v35 = vld [vmem:[#allocation6 + $0x38] sm:$0xff]  ;;  %v617_v37 = vld [vmem:[#allocation6 + $0x30] sm:$0xff]  ;;  %v616_v39 = vld [vmem:[#allocation6 + $0x28] sm:$0xff] }
  0x35   : > { %576 = vmatpush.msrb.mxu0 %v489_v61  ;;  %571 = vmatmul.f32.vlgmr.msra.gmra.mxu3 %v1161_v4  ;;  %v475_v40 = vld [vmem:[#allocation4 + $0x200] sm:$0xff]  ;;  %v1162_v42 = vld [vmem:[%s1421_s13 + $0x4] ss:$2 sm:$0xff] }
  0x36   : > { %530 = vmatpush.msra.mxu1 %v427_v6  ;;  %715 = vmatpush.msrb.mxu2 %v642_v8  ;;  %v615_v41 = vld [vmem:[#allocation6 + $0x20] sm:$0xff]  ;;  %v674_v43 = vld [vmem:[#allocation6 + $0x1f8] sm:$0xff]  ;;  %v673_v45 = vld [vmem:[#allocation6 + $0x1f0] sm:$0xff] }
  0x37   : > { %577 = vmatpush.msrb.mxu0 %v488_v1  ;;  %531 = vmatmul.f32.vlgmr.msra.gmra.mxu1 %v1159_v7  ;;  %v614_v44 = vld [vmem:[#allocation6 + $0x18] sm:$0xff]  ;;  %v613_v46 = vld [vmem:[#allocation6 + $0x10] sm:$0xff]  ;;  %v672_v47 = vld [vmem:[#allocation6 + $0x1e8] sm:$0xff] }
  0x38   : > { %695 = vmatpush.msrb.mxu1 %v626_v10  ;;  %735 = vmatpush.msrb.mxu3 %v658_v11  ;;  %v612_v48 = vld [vmem:[#allocation6 + $0x8] sm:$0xff]  ;;  %v671_v49 = vld [vmem:[#allocation6 + $0x1e0] sm:$0xff]  ;;  %v690_v51 = vld [vmem:[#allocation6 + $0x278] sm:$0xff] }
  0x39   : > { %578 = vmatpush.msrb.mxu0 %v487_v5  ;;  %716 = vmatpush.msrb.mxu2 %v641_v12  ;;  %v611_v50 = vld [vmem:[#allocation6] sm:$0xff]  ;;  %v670_v52 = vld [vmem:[#allocation6 + $0x1d8] sm:$0xff]  ;;  %v637_v53 = vld [vmem:[#allocation6 + $0xd0] sm:$0xff] }
  0x3a   : > { %696 = vmatpush.msrb.mxu1 %v625_v14  ;;  %736 = vmatpush.msrb.mxu3 %v657_v15  ;;  %v653_v54 = vld [vmem:[#allocation6 + $0x150] sm:$0xff]  ;;  %v636_v57 = vld [vmem:[#allocation6 + $0xc8] sm:$0xff]  ;;  %v635_v61 = vld [vmem:[#allocation6 + $0xc0] sm:$0xff] }
  0x3b   : > { %579 = vmatpush.msrb.mxu0 %v486_v9  ;;  %717 = vmatpush.msrb.mxu2 %v640_v16  ;;  %v669_v55 = vld [vmem:[#allocation6 + $0x1d0] sm:$0xff]  ;;  %v652_v58 = vld [vmem:[#allocation6 + $0x148] sm:$0xff]  ;;  %v651_v62 = vld [vmem:[#allocation6 + $0x140] sm:$0xff] }
  0x3c   : > { %697 = vmatpush.msrb.mxu1 %v624_v18  ;;  %737 = vmatpush.msrb.mxu3 %v656_v19  ;;  %v689_v56 = vld [vmem:[#allocation6 + $0x270] sm:$0xff]  ;;  %v668_v59 = vld [vmem:[#allocation6 + $0x1c8] sm:$0xff]  ;;  %v667_v63 = vld [vmem:[#allocation6 + $0x1c0] sm:$0xff] }
  0x3d   : > { %580 = vmatpush.msrb.mxu0 %v485_v13  ;;  %718 = vmatpush.msrb.mxu2 %v639_v20  ;;  %v688_v60 = vld [vmem:[#allocation6 + $0x268] sm:$0xff]  ;;  %v687_v0 = vld [vmem:[#allocation6 + $0x260] sm:$0xff]  ;;  %v634_v1 = vld [vmem:[#allocation6 + $0xb8] sm:$0xff]  ;;  %v1322_v13 = vmov 0.0  }
  0x3e   : > { %698 = vmatpush.msrb.mxu1 %v623_v22  ;;  %738 = vmatpush.msrb.mxu3 %v655_v23  ;;  %v650_v2 = vld [vmem:[#allocation6 + $0x138] sm:$0xff]  ;;  %v633_v5 = vld [vmem:[#allocation6 + $0xb0] sm:$0xff]  ;;  %v632_v9 = vld [vmem:[#allocation6 + $0xa8] sm:$0xff]  ;;  %599 = vst [vmem:[#allocation2] sm:$0xff] %v1322_v13 }
  0x3f   : > { %581 = vmatpush.msrb.mxu0 %v484_v17  ;;  %719 = vmatpush.msrb.mxu2 %v638_v24  ;;  %v666_v3 = vld [vmem:[#allocation6 + $0x1b8] sm:$0xff]  ;;  %v649_v6 = vld [vmem:[#allocation6 + $0x130] sm:$0xff]  ;;  %v648_v10 = vld [vmem:[#allocation6 + $0x128] sm:$0xff]  ;;  %600 = vst [vmem:[#allocation2 + $0x8] sm:$0xf] %v1322_v13 }
  0x40   : > { %699 = vmatpush.msrb.mxu1 %v622_v26  ;;  %739 = vmatpush.msrb.mxu3 %v654_v27  ;;  %v686_v4 = vld [vmem:[#allocation6 + $0x258] sm:$0xff]  ;;  %v665_v7 = vld [vmem:[#allocation6 + $0x1b0] sm:$0xff]  ;;  %v664_v11 = vld [vmem:[#allocation6 + $0x1a8] sm:$0xff]  ;;  %799 = vst [vmem:[#allocation3] sm:$0xff] %v1322_v13 }
  0x41   : > { %582 = vmatpush.msrb.mxu0 %v483_v21  ;;  %720 = vmatpush.msrb.mxu2 %v637_v53  ;;  %v685_v8 = vld [vmem:[#allocation6 + $0x250] sm:$0xff]  ;;  %v684_v12 = vld [vmem:[#allocation6 + $0x248] sm:$0xff]  ;;  %v631_v14 = vld [vmem:[#allocation6 + $0xa0] sm:$0xff] }
  0x42   : > { %700 = vmatpush.msrb.mxu1 %v621_v29  ;;  %740 = vmatpush.msrb.mxu3 %v653_v54  ;;  %v647_v15 = vld [vmem:[#allocation6 + $0x120] sm:$0xff]  ;;  %v630_v18 = vld [vmem:[#allocation6 + $0x98] sm:$0xff]  ;;  %v629_v22 = vld [vmem:[#allocation6 + $0x90] sm:$0xff] }
  0x43   : > { %583 = vmatpush.msrb.mxu0 %v482_v25  ;;  %721 = vmatpush.msrb.mxu2 %v636_v57  ;;  %v663_v16 = vld [vmem:[#allocation6 + $0x1a0] sm:$0xff]  ;;  %v646_v19 = vld [vmem:[#allocation6 + $0x118] sm:$0xff]  ;;  %v645_v23 = vld [vmem:[#allocation6 + $0x110] sm:$0xff] }
  0x44   : > { %701 = vmatpush.msrb.mxu1 %v620_v31  ;;  %741 = vmatpush.msrb.mxu3 %v652_v58  ;;  %v683_v17 = vld [vmem:[#allocation6 + $0x240] sm:$0xff]  ;;  %v662_v20 = vld [vmem:[#allocation6 + $0x198] sm:$0xff]  ;;  %v661_v24 = vld [vmem:[#allocation6 + $0x190] sm:$0xff] }
  0x45   : > { %584 = vmatpush.msrb.mxu0 %v481_v28  ;;  %722 = vmatpush.msrb.mxu2 %v635_v61  ;;  %v682_v21 = vld [vmem:[#allocation6 + $0x238] sm:$0xff]  ;;  %v681_v25 = vld [vmem:[#allocation6 + $0x230] sm:$0xff]  ;;  %v628_v26 = vld [vmem:[#allocation6 + $0x88] sm:$0xff] }
  0x46   : > { %702 = vmatpush.msrb.mxu1 %v619_v33  ;;  %742 = vmatpush.msrb.mxu3 %v651_v62  ;;  %v644_v27 = vld [vmem:[#allocation6 + $0x108] sm:$0xff]  ;;  %v643_v31 = vld [vmem:[#allocation6 + $0x100] sm:$0xff]  ;;  %v856_v53 = vld [vmem:[#allocation8 + $0x170] sm:$0xff] }
  0x47   : > { %585 = vmatpush.msrb.mxu0 %v480_v30  ;;  %723 = vmatpush.msrb.mxu2 %v634_v1  ;;  %v660_v28 = vld [vmem:[#allocation6 + $0x188] sm:$0xff]  ;;  %v627_v30 = vld [vmem:[#allocation6 + $0x80] sm:$0xff]  ;;  %v820_v58 = vld [vmem:[#allocation8 + $0x50] sm:$0xff] }
  0x48   : > { %703 = vmatpush.msrb.mxu1 %v618_v35  ;;  %743 = vmatpush.msrb.mxu3 %v650_v2  ;;  %v680_v29 = vld [vmem:[#allocation6 + $0x228] sm:$0xff]  ;;  %v679_v33 = vld [vmem:[#allocation6 + $0x220] sm:$0xff]  ;;  %v817_v1 = vld [vmem:[#allocation8 + $0x38] sm:$0xff] }
  0x49   : > { %586 = vmatpush.msrb.mxu0 %v479_v32  ;;  %724 = vmatpush.msrb.mxu2 %v633_v5  ;;  %v659_v32 = vld [vmem:[#allocation6 + $0x180] sm:$0xff]  ;;  %v855_v57 = vld [vmem:[#allocation8 + $0x168] sm:$0xff]  ;;  %v816_v2 = vld [vmem:[#allocation8 + $0x30] sm:$0xff] }
  0x4a   : > { %704 = vmatpush.msrb.mxu1 %v617_v37  ;;  %744 = vmatpush.msrb.mxu3 %v649_v6  ;;  %v677_v37 = vld [vmem:[#allocation6 + $0x210] sm:$0xff]  ;;  %v819_v61 = vld [vmem:[#allocation8 + $0x48] sm:$0xff]  ;;  %v873_v5 = vld [vmem:[#allocation8 + $0x1f8] sm:$0xff] }
  0x4b   : > { %587 = vmatpush.msrb.mxu0 %v478_v34  ;;  %725 = vmatpush.msrb.mxu2 %v632_v9  ;;  %v1208_v34 = vld [vmem:[%s1454_s2] ss:$0 sm:$0xff]  ;;  %v813_v6 = vld [vmem:[#allocation8 + $0x18] sm:$0xff] }
  0x4c   : > { %705 = vmatpush.msrb.mxu1 %v616_v39  ;;  %745 = vmatpush.msrb.mxu3 %v648_v10  ;;  %v871_v13 = vld [vmem:[#allocation8 + $0x1e8] sm:$0xff] }
  0x4d   : > { %588 = vmatpush.msrb.mxu0 %v477_v36  ;;  %726 = vmatpush.msrb.mxu2 %v631_v14  ;;  %v678_v36 = vld [vmem:[#allocation6 + $0x218] sm:$0xff] }
  0x4e   : > { %706 = vmatpush.msrb.mxu1 %v615_v41  ;;  %746 = vmatpush.msrb.mxu3 %v647_v15  ;;  %v675_v41 = vld [vmem:[#allocation6 + $0x200] sm:$0xff]  ;;  %v811_v15 = vld [vmem:[#allocation8 + $0x8] sm:$0xff] }
  0x4f   : > { %589 = vmatpush.msrb.mxu0 %v476_v38  ;;  %727 = vmatpush.msrb.mxu2 %v630_v18  ;;  %v870_v18 = vld [vmem:[#allocation8 + $0x1e0] sm:$0xff] }
  0x50   : > { %707 = vmatpush.msrb.mxu1 %v614_v44  ;;  %747 = vmatpush.msrb.mxu3 %v646_v19  ;;  %v825_v44 = vld [vmem:[#allocation8 + $0x78] sm:$0xff]  ;;  %v810_v19 = vld [vmem:[#allocation8] sm:$0xff] }
  0x51   : > { %590 = vmatpush.msrb.mxu0 %v475_v40  ;;  %728 = vmatpush.msrb.mxu2 %v629_v22  ;;  %v676_v40 = vld [vmem:[#allocation6 + $0x208] sm:$0xff]  ;;  %v869_v22 = vld [vmem:[#allocation8 + $0x1d8] sm:$0xff] }
  0x52   : > { %591 = vmatmul.f32.vlgmr.msrb.gmra.mxu0 %v1162_v42  ;;  %708 = vmatpush.msrb.mxu1 %v613_v46 }
  0x53   : > { %755 = vmatpush.msra.mxu0 %v674_v43  ;;  %748 = vmatpush.msrb.mxu3 %v645_v23  ;;  %v889_v23 = vld [vmem:[#allocation8 + $0x278] sm:$0xff] }
  0x54   : > { %709 = vmatpush.msrb.mxu1 %v612_v48  ;;  %729 = vmatpush.msrb.mxu2 %v628_v26  ;;  %v868_v26 = vld [vmem:[#allocation8 + $0x1d0] sm:$0xff] }
  0x55   : > { %756 = vmatpush.msra.mxu0 %v673_v45  ;;  %749 = vmatpush.msrb.mxu3 %v644_v27  ;;  %v824_v45 = vld [vmem:[#allocation8 + $0x70] sm:$0xff] }
  0x56   : > { %710 = vmatpush.msrb.mxu1 %v611_v50  ;;  %730 = vmatpush.msrb.mxu2 %v627_v30  ;;  %v841_v50 = vld [vmem:[#allocation8 + $0xf8] sm:$0xff]  ;;  %v888_v27 = vld [vmem:[#allocation8 + $0x270] sm:$0xff]  ;;  %v867_v30 = vld [vmem:[#allocation8 + $0x1c8] sm:$0xff] }
  0x57   : > { %757 = vmatpush.msra.mxu0 %v672_v47  ;;  %750 = vmatpush.msrb.mxu3 %v643_v31  ;;  %v823_v47 = vld [vmem:[#allocation8 + $0x68] sm:$0xff] }
  0x58   : > { %775 = vmatpush.msra.mxu1 %v690_v51  ;;  %894 = vmatpush.msra.mxu2 %v825_v44  ;;  %v857_v51 = vld [vmem:[#allocation8 + $0x178] sm:$0xff]  ;;  %v887_v31 = vld [vmem:[#allocation8 + $0x268] sm:$0xff] }
  0x59   : > { %758 = vmatpush.msra.mxu0 %v671_v49  ;;  %v822_v49 = vld [vmem:[#allocation8 + $0x60] sm:$0xff]  ;;  %914 = vmatpush.msra.mxu3 %v841_v50  ;;  %v831_v44 = vld [vmem:[#allocation8 + $0xa8] sm:$0xff] }
  0x5a   : > { %776 = vmatpush.msra.mxu1 %v689_v56  ;;  %895 = vmatpush.msra.mxu2 %v824_v45  ;;  %v839_v56 = vld [vmem:[#allocation8 + $0xe8] sm:$0xff]  ;;  %v862_v50 = vld [vmem:[#allocation8 + $0x1a0] sm:$0xff] }
  0x5b   : > { %759 = vmatpush.msra.mxu0 %v670_v52  ;;  %v840_v52 = vld [vmem:[#allocation8 + $0xf0] sm:$0xff]  ;;  %v847_v45 = vld [vmem:[#allocation8 + $0x128] sm:$0xff] }
  0x5c   : > { %777 = vmatpush.msra.mxu1 %v688_v60  ;;  %896 = vmatpush.msra.mxu2 %v823_v47  ;;  %v883_v47 = vld [vmem:[#allocation8 + $0x248] sm:$0xff] }
  0x5d   : > { %760 = vmatpush.msra.mxu0 %v669_v55  ;;  %v821_v55 = vld [vmem:[#allocation8 + $0x58] sm:$0xff]  ;;  %915 = vmatpush.msra.mxu3 %v840_v52 }
  0x5e   : > { %778 = vmatpush.msra.mxu1 %v687_v0  ;;  %897 = vmatpush.msra.mxu2 %v822_v49  ;;  %v846_v49 = vld [vmem:[#allocation8 + $0x120] sm:$0xff]  ;;  %v829_v52 = vld [vmem:[#allocation8 + $0x98] sm:$0xff] }
  0x5f   : > { %761 = vmatpush.msra.mxu0 %v668_v59  ;;  %916 = vmatpush.msra.mxu3 %v839_v56  ;;  %v828_v56 = vld [vmem:[#allocation8 + $0x90] sm:$0xff] }
  0x60   : > { %779 = vmatpush.msra.mxu1 %v686_v4  ;;  %898 = vmatpush.msra.mxu2 %v821_v55  ;;  %v814_v4 = vld [vmem:[#allocation8 + $0x20] sm:$0xff]  ;;  %v881_v55 = vld [vmem:[#allocation8 + $0x238] sm:$0xff] }
  0x61   : > { %762 = vmatpush.msra.mxu0 %v667_v63  ;;  %v818_v63 = vld [vmem:[#allocation8 + $0x40] sm:$0xff] }
  0x62   : > { %780 = vmatpush.msra.mxu1 %v685_v8  ;;  %899 = vmatpush.msra.mxu2 %v820_v58  ;;  %v860_v58 = vld [vmem:[#allocation8 + $0x190] sm:$0xff] }
  0x63   : > { %763 = vmatpush.msra.mxu0 %v666_v3  ;;  %v815_v3 = vld [vmem:[#allocation8 + $0x28] sm:$0xff] }
  0x64   : > { %781 = vmatpush.msra.mxu1 %v684_v12  ;;  %900 = vmatpush.msra.mxu2 %v819_v61  ;;  %v812_v12 = vld [vmem:[#allocation8 + $0x10] sm:$0xff]  ;;  %v843_v61 = vld [vmem:[#allocation8 + $0x108] sm:$0xff] }
  0x65   : > { %764 = vmatpush.msra.mxu0 %v665_v7 }
  0x66   : > { %782 = vmatpush.msra.mxu1 %v683_v17  ;;  %901 = vmatpush.msra.mxu2 %v818_v63  ;;  %v854_v17 = vld [vmem:[#allocation8 + $0x160] sm:$0xff]  ;;  %v879_v63 = vld [vmem:[#allocation8 + $0x228] sm:$0xff] }
  0x67   : > { %765 = vmatpush.msra.mxu0 %v664_v11  ;;  %v872_v11 = vld [vmem:[#allocation8 + $0x1f0] sm:$0xff] }
  0x68   : > { %783 = vmatpush.msra.mxu1 %v682_v21  ;;  %902 = vmatpush.msra.mxu2 %v817_v1  ;;  %v853_v21 = vld [vmem:[#allocation8 + $0x158] sm:$0xff]  ;;  %v842_v1 = vld [vmem:[#allocation8 + $0x100] sm:$0xff] }
  0x69   : > { %766 = vmatpush.msra.mxu0 %v663_v16  ;;  %v838_v16 = vld [vmem:[#allocation8 + $0xe0] sm:$0xff] }
  0x6a   : > { %784 = vmatpush.msra.mxu1 %v681_v25  ;;  %903 = vmatpush.msra.mxu2 %v816_v2  ;;  %v852_v25 = vld [vmem:[#allocation8 + $0x150] sm:$0xff]  ;;  %v858_v2 = vld [vmem:[#allocation8 + $0x180] sm:$0xff] }
  0x6b   : > { %767 = vmatpush.msra.mxu0 %v662_v20  ;;  %917 = vmatpush.msra.mxu3 %v838_v16  ;;  %v837_v20 = vld [vmem:[#allocation8 + $0xd8] sm:$0xff] }
  0x6c   : > { %785 = vmatpush.msra.mxu1 %v680_v29  ;;  %904 = vmatpush.msra.mxu2 %v815_v3  ;;  %v851_v29 = vld [vmem:[#allocation8 + $0x148] sm:$0xff]  ;;  %v878_v3 = vld [vmem:[#allocation8 + $0x220] sm:$0xff] }
  0x6d   : > { %768 = vmatpush.msra.mxu0 %v661_v24  ;;  %918 = vmatpush.msra.mxu3 %v837_v20  ;;  %v836_v24 = vld [vmem:[#allocation8 + $0xd0] sm:$0xff] }
  0x6e   : > { %786 = vmatpush.msra.mxu1 %v679_v33  ;;  %905 = vmatpush.msra.mxu2 %v814_v4  ;;  %v850_v33 = vld [vmem:[#allocation8 + $0x140] sm:$0xff]  ;;  %v877_v4 = vld [vmem:[#allocation8 + $0x218] sm:$0xff] }
  0x6f   : > { %769 = vmatpush.msra.mxu0 %v660_v28  ;;  %919 = vmatpush.msra.mxu3 %v836_v24  ;;  %v835_v28 = vld [vmem:[#allocation8 + $0xc8] sm:$0xff] }
  0x70   : > { %787 = vmatpush.msra.mxu1 %v678_v36  ;;  %906 = vmatpush.msra.mxu2 %v813_v6  ;;  %v833_v36 = vld [vmem:[#allocation8 + $0xb8] sm:$0xff]  ;;  %v875_v6 = vld [vmem:[#allocation8 + $0x208] sm:$0xff] }
  0x71   : > { %770 = vmatpush.msra.mxu0 %v659_v32  ;;  %920 = vmatpush.msra.mxu3 %v835_v28  ;;  %v834_v32 = vld [vmem:[#allocation8 + $0xc0] sm:$0xff] }
  0x72   : > { %788 = vmatpush.msra.mxu1 %v677_v37  ;;  %907 = vmatpush.msra.mxu2 %v812_v12  ;;  %v849_v37 = vld [vmem:[#allocation8 + $0x138] sm:$0xff] }
  0x73   : > { %934 = vmatpush.msrb.mxu0 %v857_v51  ;;  %921 = vmatpush.msra.mxu3 %v834_v32  ;;  %v882_v51 = vld [vmem:[#allocation8 + $0x240] sm:$0xff] }
  0x74   : > { %789 = vmatpush.msra.mxu1 %v676_v40  ;;  %908 = vmatpush.msra.mxu2 %v811_v15  ;;  %v832_v40 = vld [vmem:[#allocation8 + $0xb0] sm:$0xff] }
  0x75   : > { %935 = vmatpush.msrb.mxu0 %v856_v53  ;;  %922 = vmatpush.msra.mxu3 %v833_v36  ;;  %v845_v53 = vld [vmem:[#allocation8 + $0x118] sm:$0xff] }
  0x76   : > { %790 = vmatpush.msra.mxu1 %v675_v41  ;;  %909 = vmatpush.msra.mxu2 %v810_v19  ;;  %v848_v41 = vld [vmem:[#allocation8 + $0x130] sm:$0xff] }
  0x77   : > { %936 = vmatpush.msrb.mxu0 %v855_v57  ;;  %923 = vmatpush.msra.mxu3 %v832_v40  ;;  %v844_v57 = vld [vmem:[#allocation8 + $0x110] sm:$0xff] }
  0x79   : > { %937 = vmatpush.msrb.mxu0 %v854_v17  ;;  %924 = vmatpush.msra.mxu3 %v831_v44 }
  0x7b   : > { %938 = vmatpush.msrb.mxu0 %v853_v21 }
  0x7d   : > { %939 = vmatpush.msrb.mxu0 %v852_v25 }
  0x7f   : > { %940 = vmatpush.msrb.mxu0 %v851_v29 }
  0x81   : > { %941 = vmatpush.msrb.mxu0 %v850_v33 }
  0x83   : > { %942 = vmatpush.msrb.mxu0 %v849_v37 }
  0x85   : > { %943 = vmatpush.msrb.mxu0 %v848_v41 }
  0x87   : > { %944 = vmatpush.msrb.mxu0 %v847_v45 }
  0x89   : > { %945 = vmatpush.msrb.mxu0 %v846_v49 }
  0x8b   : > { %946 = vmatpush.msrb.mxu0 %v845_v53 }
  0x8d   : > { %947 = vmatpush.msrb.mxu0 %v844_v57 }
  0x8f   : > { %948 = vmatpush.msrb.mxu0 %v843_v61 }
  0x91   : > { %949 = vmatpush.msrb.mxu0 %v842_v1 }
  0xb1   : > { %v512_v35 = vpop.f32.mrf.mxu0 }
  0xb2   : > { %v513_v38 = vadd.f32 %v1208_v34, %v512_v35  ;;  %v866_v34 = vld [vmem:[#allocation8 + $0x1c0] sm:$0xff] }
  0xb3   : > { %v886_v35 = vld [vmem:[#allocation8 + $0x260] sm:$0xff] }
  0xb4   : > { %v532_v39 = vpop.f32.mrf.mxu1 }
  0xb5   : > { %v533_v42 = vadd.f32 %v532_v39, %v513_v38  ;;  %v865_v38 = vld [vmem:[#allocation8 + $0x1b8] sm:$0xff] }
  0xb6   : > { %v552_v43 = vpop.f32.mrf.mxu2  ;;  %v885_v39 = vld [vmem:[#allocation8 + $0x258] sm:$0xff] }
  0xb7   : > { %v553_v46 = vadd.f32 %v552_v43, %v533_v42  ;;  %v864_v42 = vld [vmem:[#allocation8 + $0x1b0] sm:$0xff] }
  0xb8   : > { %v572_v48 = vpop.f32.mrf.mxu3  ;;  %v884_v43 = vld [vmem:[#allocation8 + $0x250] sm:$0xff] }
  0xb9   : > { %v573_v54 = vadd.f32 %v572_v48, %v553_v46  ;;  %v863_v46 = vld [vmem:[#allocation8 + $0x1a8] sm:$0xff]  ;;  %v830_v48 = vld [vmem:[#allocation8 + $0xa0] sm:$0xff] }
  0xba   : > { %925 = vmatpush.msra.mxu3 %v830_v48 }
  0xbc   : > { %926 = vmatpush.msra.mxu3 %v829_v52 }
  0xbe   : > { %927 = vmatpush.msra.mxu3 %v828_v56 }
  0xcf   : > { %v592_v59 = vpop.f32.mrf.mxu0 }
  0xd0   : > { %v593_v60 = vadd.f32 %v592_v59, %v573_v54  ;;  %v861_v54 = vld [vmem:[#allocation8 + $0x198] sm:$0xff]  ;;  %v880_v59 = vld [vmem:[#allocation8 + $0x230] sm:$0xff] }
  0xd2   : > { %vm595_vm0 = vcmp.ge.f32.partialorder %v593_v60, 0.0  ;;  %v596_v62 = vmul.f32 0.1, %v593_v60 }
  0xd4   : > { %v597_v0 = vsel %vm595_vm0, %v593_v60, %v596_v62  ;;  %v827_v60 = vld [vmem:[#allocation8 + $0x88] sm:$0xff] }
  0xd5   : > { %598 = vst [vmem:[%s393_s19] sm:$0xff] %v597_v0  ;;  %v859_v62 = vld [vmem:[#allocation8 + $0x188] sm:$0xff]  ;;  %928 = vmatpush.msra.mxu3 %v827_v60 }
  0xd6   : > { %601 = vst [vmem:[#allocation2 + $0x2] sm:$0xff] %v597_v0  ;;  %v826_v0 = vld [vmem:[#allocation8 + $0x80] sm:$0xff] }
  0xd7   : > { %929 = vmatpush.msra.mxu3 %v826_v0 }
  0xdd   : > { %v602_v7 = vld [vmem:[#allocation2] ss:$2 sm:$0xf]  ;;  %v604_v8 = vld [vmem:[#allocation2 + $0x1] ss:$2 sm:$0xf] }
  0xde   : > { %711 = vmatmul.f32.vlgmr.msrb.gmra.mxu1 %v602_v7  ;;  %731 = vmatmul.f32.vlgmr.msrb.gmra.mxu2 %v604_v8  ;;  %v606_v9 = vld [vmem:[#allocation2 + $0x2] ss:$2 sm:$0xf]  ;;  %v608_v10 = vld [vmem:[#allocation2 + $0x3] ss:$2 sm:$0xf] }
  0xdf   : > { %751 = vmatmul.f32.vlgmr.msrb.gmra.mxu3 %v606_v9  ;;  %771 = vmatmul.f32.vlgmr.msra.gmra.mxu0 %v608_v10  ;;  %v610_v14 = vld [vmem:[#allocation2 + $0x4] ss:$2 sm:$0xf]  ;;  %v1209_v7 = vld [vmem:[%s1456_s4] ss:$0 sm:$0xff]  ;;  %v874_v8 = vld [vmem:[#allocation8 + $0x200] sm:$0xff] }
  0xe0   : > { %954 = vmatpush.msrb.mxu1 %v873_v5  ;;  %974 = vmatpush.msrb.mxu2 %v889_v23  ;;  %v876_v5 = vld [vmem:[#allocation8 + $0x210] sm:$0xff] }
  0xe2   : > { %955 = vmatpush.msrb.mxu1 %v872_v11  ;;  %975 = vmatpush.msrb.mxu2 %v888_v27 }
  0xe4   : > { %956 = vmatpush.msrb.mxu1 %v871_v13  ;;  %976 = vmatpush.msrb.mxu2 %v887_v31 }
  0xe6   : > { %791 = vmatmul.f32.vlgmr.msra.gmra.mxu1 %v610_v14  ;;  %977 = vmatpush.msrb.mxu2 %v886_v35 }
  0xe7   : > { %957 = vmatpush.msrb.mxu1 %v870_v18 }
  0xe8   : > { %978 = vmatpush.msrb.mxu2 %v885_v39 }
  0xe9   : > { %958 = vmatpush.msrb.mxu1 %v869_v22 }
  0xea   : > { %979 = vmatpush.msrb.mxu2 %v884_v43 }
  0xeb   : > { %959 = vmatpush.msrb.mxu1 %v868_v26  ;;  %v1210_v26 = vld [vmem:[%s1458_s6] ss:$0 sm:$0xff] }
  0xec   : > { %980 = vmatpush.msrb.mxu2 %v883_v47 }
  0xed   : > { %960 = vmatpush.msrb.mxu1 %v867_v30 }
  0xee   : > { %981 = vmatpush.msrb.mxu2 %v882_v51 }
  0xef   : > { %961 = vmatpush.msrb.mxu1 %v866_v34 }
  0xf0   : > { %982 = vmatpush.msrb.mxu2 %v881_v55 }
  0xf1   : > { %962 = vmatpush.msrb.mxu1 %v865_v38 }
  0xf2   : > { %983 = vmatpush.msrb.mxu2 %v880_v59 }
  0xf3   : > { %963 = vmatpush.msrb.mxu1 %v864_v42 }
  0xf4   : > { %984 = vmatpush.msrb.mxu2 %v879_v63 }
  0xf5   : > { %964 = vmatpush.msrb.mxu1 %v863_v46 }
  0xf6   : > { %985 = vmatpush.msrb.mxu2 %v878_v3 }
  0xf7   : > { %965 = vmatpush.msrb.mxu1 %v862_v50 }
  0xf8   : > { %986 = vmatpush.msrb.mxu2 %v877_v4 }
  0xf9   : > { %966 = vmatpush.msrb.mxu1 %v861_v54 }
  0xfa   : > { %987 = vmatpush.msrb.mxu2 %v876_v5 }
  0xfb   : > { %967 = vmatpush.msrb.mxu1 %v860_v58 }
  0xfc   : > { %988 = vmatpush.msrb.mxu2 %v875_v6 }
  0xfd   : > { %968 = vmatpush.msrb.mxu1 %v859_v62 }
  0xfe   : > { %989 = vmatpush.msrb.mxu2 %v874_v8 }
  0xff   : > { %969 = vmatpush.msrb.mxu1 %v858_v2 }
 0x15b   : > { %v712_v9 = vpop.f32.mrf.mxu1 }
 0x15c   : > { %v713_v10 = vadd.f32 %v1209_v7, %v712_v9  ;;  %v772_v15 = vpop.f32.mrf.mxu0 }
 0x161   : > { %v732_v11 = vpop.f32.mrf.mxu2 }
 0x162   : > { %v733_v12 = vadd.f32 %v732_v11, %v713_v10  ;;  %v752_v13 = vpop.f32.mrf.mxu3 }
 0x163   : > { %v792_v17 = vpop.f32.mrf.mxu1 }
 0x164   : > { %v753_v14 = vadd.f32 %v752_v13, %v733_v12 }
 0x166   : > { %v773_v16 = vadd.f32 %v772_v15, %v753_v14 }
 0x168   : > { %v793_v18 = vadd.f32 %v792_v17, %v773_v16 }
 0x16a   : > { %vm795_vm1 = vcmp.ge.f32.partialorder %v793_v18, 0.0  ;;  %v796_v19 = vmul.f32 0.1, %v793_v18 }
 0x16c   : > { %v797_v20 = vsel %vm795_vm1, %v793_v18, %v796_v19 }
 0x16d   : > { %798 = vst [vmem:[%s397_s25] sm:$0xf] %v797_v20 }
 0x16e   : > { %800 = vst [vmem:[#allocation3 + $0x2] sm:$0xf] %v797_v20 }
 0x175   : > { %v801_v21 = vld [vmem:[#allocation3] ss:$2 sm:$0x3]  ;;  %v803_v22 = vld [vmem:[#allocation3 + $0x1] ss:$2 sm:$0x3] }
 0x176   : > { %910 = vmatmul.f32.vlgmr.msra.gmra.mxu2 %v801_v21  ;;  %930 = vmatmul.f32.vlgmr.msra.gmra.mxu3 %v803_v22  ;;  %v805_v23 = vld [vmem:[#allocation3 + $0x2] ss:$2 sm:$0x3]  ;;  %v807_v24 = vld [vmem:[#allocation3 + $0x3] ss:$2 sm:$0x3] }
 0x177   : > { %950 = vmatmul.f32.vlgmr.msrb.gmra.mxu0 %v805_v23  ;;  %970 = vmatmul.f32.vlgmr.msrb.gmra.mxu1 %v807_v24  ;;  %v809_v25 = vld [vmem:[#allocation3 + $0x4] ss:$2 sm:$0x3] }
 0x17e   : > { %990 = vmatmul.f32.vlgmr.msrb.gmra.mxu2 %v809_v25 }
 0x1f4   : > { %v951_v31 = vpop.f32.mrf.mxu0  ;;  %v971_v33 = vpop.f32.mrf.mxu1 }
 0x1f9   : > { %v911_v27 = vpop.f32.mrf.mxu2  ;;  %v931_v29 = vpop.f32.mrf.mxu3 }
 0x1fa   : > { %v912_v28 = vadd.f32 %v1210_v26, %v911_v27 }
 0x1fc   : > { %v932_v30 = vadd.f32 %v931_v29, %v912_v28 }
 0x1fe   : > { %v952_v32 = vadd.f32 %v951_v31, %v932_v30 }
 0x200   : > { %v972_v34 = vadd.f32 %v971_v33, %v952_v32 }
 0x201   : > { %v991_v35 = vpop.f32.mrf.mxu2 }
 0x202   : > { %v992_v36 = vadd.f32 %v991_v35, %v972_v34 }
 0x204   : > { %vm994_vm2 = vcmp.ge.f32.partialorder %v992_v36, 0.0  ;;  %v995_v37 = vmul.f32 0.1, %v992_v36 }
 0x206   : > { %v996_v38 = vsel %vm994_vm2, %v992_v36, %v995_v37 }
 0x207   : > { %997 = vst [vmem:[%s401_s12] sm:$0x3] %v996_v38 }
 0x208 PF: > { %s22_s30 = sadd.s32 1, %s1315_s30  }
 0x209   : > { %p19_p7 = scmp.ge.s32.totalorder %s22_s30, 4  }
 0x20b   :  { %21 = sbr.rel (!%p19_p7) target bundleno = 2 (0x2), region = 127 }
 0x210   :  { %1045 = vsyncpa [#allocation5], 1 }
 0x211   :  { %1047 = vsyncpa [#allocation5 + $0x1], 1 }
 0x212   :  { %1048 = vsyncpa [#allocation7], 1 }

</bundles_post_ra>
